<compile_context>
chip_gen: v5e
topology: v5e:2x2
jax: 0.10.0
libtpu: 0.0.40
codegen_flags: <defaults>
</compile_context>

<pallas_src>
import jax
import jax.numpy as jnp
from jax.experimental import pallas as pl
from jax.experimental.pallas import tpu as pltpu

HIDDEN = 16      # fixed by nn.Linear(1, 16) inside Projection
GCN_ITERS = 3    # fixed by the `for _ in range(3)` loop in GCNConvEmbedding


def _round_up(x, m):
    return (x + m - 1) // m * m


def _full_spec(shape):
    zeros = tuple(0 for _ in shape)
    return pl.BlockSpec(shape, lambda: zeros)


# ----------------------------------------------------------------------------
# Projection: tiled masked-mean over the MLP(index) embedding table
# ----------------------------------------------------------------------------

def _projection_kernel(mask_ref, table_ref, o_ref, acc_ref, cnt_ref):
    s_idx = pl.program_id(1)

    @pl.when(s_idx == 0)
    def _init():
        acc_ref[...] = jnp.zeros_like(acc_ref)
        cnt_ref[...] = jnp.zeros_like(cnt_ref)

    mask = mask_ref[...]                                   # (TL, TS) bf16, exact 0/1
    # bf16 x bf16 MXU matmul with f32 accumulation (mask is lossless in bf16).
    acc_ref[...] += jnp.dot(mask, table_ref[...],
                            preferred_element_type=jnp.float32)
    cnt_ref[...] += jnp.sum(mask.astype(jnp.float32), axis=-1, keepdims=True)

    @pl.when(s_idx == pl.num_programs(1) - 1)
    def _finalize():
        cnt = cnt_ref[...]
        inv = pl.reciprocal(jnp.where(cnt > 0.0, cnt, 1.0), approx=True)
        o_ref[...] = jnp.where(cnt > 0.0, acc_ref[...] * inv, 0.0).astype(o_ref.dtype)


def _mlp_index_table(num_scenes, w1, b1, w2, b2):
    """M[j] = Linear(16,E)(relu(Linear(1,16)(float(j)))) for j in [0, S)."""
    idx = jnp.arange(num_scenes, dtype=jnp.float32)[:, None]       # (S, 1)
    h = jnp.maximum(idx @ w1 + b1, 0.0)                            # (S, 16)
    return h @ w2 + b2                                             # (S, E)


def projection_forward(normalized_matrix, w1, b1, w2, b2, *, tl=256, ts=512):
    L, S = normalized_matrix.shape
    E = w2.shape[1]

    # Hoisted out of the kernel (review feedback): computed once, not per tile.
    table = _mlp_index_table(S, w1, b1, w2, b2)                    # (S, E) f32

    E_pad = _round_up(E, 128)                  # lane-dense output
    TL = min(tl, _round_up(L, 8))              # sublane-aligned learner tile
    TS = min(ts, _round_up(S, 128))            # lane-aligned reduction tile
    L_pad = _round_up(L, TL)
    S_pad = _round_up(S, TS)

    # Pre-binarized bf16 mask: halves the dominant HBM stream vs f32 A and is
    # exact (0/1) in bf16.  Zero-padding keeps counts and sums unchanged.
    mask = (normalized_matrix != 0.0).astype(jnp.bfloat16)
    mask = jnp.pad(mask, ((0, L_pad - L), (0, S_pad - S)))
    table_b = jnp.pad(table, ((0, S_pad - S), (0, E_pad - E))).astype(jnp.bfloat16)

    out = pl.pallas_call(
        _projection_kernel,
        out_shape=jax.ShapeDtypeStruct((L_pad, E_pad), jnp.float32),
        grid=(L_pad // TL, S_pad // TS),
        in_specs=[
            pl.BlockSpec((TL, TS), lambda i, k: (i, k)),        # mask tile
            pl.BlockSpec((TS, E_pad), lambda i, k: (k, 0)),     # table tile
        ],
        out_specs=pl.BlockSpec((TL, E_pad), lambda i, k: (i, 0)),
        scratch_shapes=[
            pltpu.VMEM((TL, E_pad), jnp.float32),   # acc
            pltpu.VMEM((TL, 1), jnp.float32),       # nonzero count
        ],
        compiler_params=pltpu.CompilerParams(
            dimension_semantics=("parallel", "arbitrary")),
    )(mask, table_b)
    return out[:L, :E]


# ----------------------------------------------------------------------------
# GCNConvEmbedding: 3 x [ h = relu((adj @ h) @ W) ]
# ----------------------------------------------------------------------------

def _gcn_kernel(adj_ref, h_ref, w_ref, o_ref):
    adj = adj_ref[...]
    w = w_ref[...]
    h = h_ref[...]
    for _ in range(GCN_ITERS):
        agg = jnp.dot(adj, h, preferred_element_type=jnp.float32)
        h = jnp.maximum(jnp.dot(agg, w, preferred_element_type=jnp.float32), 0.0)
    o_ref[...] = h


def gcn_forward(h, edge_index, edge_attr, W):
    N, E = h.shape
    row, col = edge_index[0], edge_index[1]
    # Dense aggregation operator: adj[c, r] = sum_{edges r->c} attr, so that
    # adj @ h == scatter_add(h[row] * attr[:, None], col, dim_size=N).
    # TODO(synk): the edge-list scatter itself is data-dependent; it is built
    # with an XLA scatter-add in the wrapper rather than inside Pallas.
    adj = jnp.zeros((N, N), jnp.float32).at[col, row].add(
        edge_attr.astype(jnp.float32))

    N_pad = _round_up(N, 8)
    E_pad = _round_up(E, 128)
    adj_p = jnp.pad(adj, ((0, N_pad - N), (0, N_pad - N)))
    h_p = jnp.pad(h.astype(jnp.float32), ((0, N_pad - N), (0, E_pad - E)))
    w_p = jnp.pad(W.astype(jnp.float32), ((0, E_pad - E), (0, E_pad - E)))

    # TODO(synk): for large graphs, tile adj over node blocks (one pallas_call
    # per GCN hop with a row-tile grid) instead of this full-block call.
    out = pl.pallas_call(
        _gcn_kernel,
        out_shape=jax.ShapeDtypeStruct((N_pad, E_pad), jnp.float32),
        grid=(),
        in_specs=[_full_spec((N_pad, N_pad)),
                  _full_spec((N_pad, E_pad)),
                  _full_spec((E_pad, E_pad))],
        out_specs=_full_spec((N_pad, E_pad)),
    )(adj_p, h_p, w_p)
    return out[:N, :E]


# ----------------------------------------------------------------------------
# MetaPathAttention: softmax over per-path scores, weighted sum of paths
# ----------------------------------------------------------------------------

def _metapath_attention_kernel(emb_ref, watt_ref, batt_ref, o_ref):
    num_paths = emb_ref.shape[0]
    w = watt_ref[...]                    # (1, E_pad)
    b = batt_ref[...]                    # (1, 1)

    embs = [emb_ref[p] for p in range(num_paths)]                         # (N, E)
    scores = [jnp.sum(e * w, axis=-1, keepdims=True) + b for e in embs]   # (N, 1)

    m = scores[0]
    for s in scores[1:]:
        m = jnp.maximum(m, s)
    exps = [jnp.exp(s - m) for s in scores]
    denom = exps[0]
    for e in exps[1:]:
        denom = denom + e
    inv = 1.0 / denom

    out = embs[0] * (exps[0] * inv)
    for e, ex in zip(embs[1:], exps[1:]):
        out = out + e * (ex * inv)
    o_ref[...] = out


def metapath_attention_forward(embeddings, w_att, b_att):
    P, N, E = embeddings.shape
    N_pad = _round_up(N, 8)
    E_pad = _round_up(E, 128)
    emb_p = jnp.pad(embeddings.astype(jnp.float32),
                    ((0, 0), (0, N_pad - N), (0, E_pad - E)))
    w_p = jnp.pad(w_att.reshape(1, E).astype(jnp.float32),
                  ((0, 0), (0, E_pad - E)))
    b_p = b_att.reshape(1, 1).astype(jnp.float32)

    out = pl.pallas_call(
        _metapath_attention_kernel,
        out_shape=jax.ShapeDtypeStruct((N_pad, E_pad), jnp.float32),
        grid=(),
        in_specs=[_full_spec((P, N_pad, E_pad)),
                  _full_spec((1, E_pad)),
                  _full_spec((1, 1))],
        out_specs=_full_spec((N_pad, E_pad)),
    )(emb_p, w_p, b_p)
    return out[:N, :E]


# ----------------------------------------------------------------------------
# HGC_ALL forward (Pallas) and pure-JAX reference
# ----------------------------------------------------------------------------

def hgc_all_forward(params,
                    lrn_init, scn_init, cpt_init,
                    p_lsl_edge_index, p_lsl_edge_attr,
                    p_scs_edge_index, p_scs_edge_attr,
                    p_sls_edge_index, p_sls_edge_attr,
                    p_cc_edge_index, p_cc_edge_attr,
                    p_cac_edge_index, p_cac_edge_attr,
                    p_csc_edge_index, p_csc_edge_attr):
    emb_lrn = projection_forward(lrn_init, *params["proj_lrn"])
    emb_scn = projection_forward(scn_init, *params["proj_scn"])
    emb_cpt = projection_forward(cpt_init, *params["proj_cpt"])

    out_lsl = gcn_forward(emb_lrn, p_lsl_edge_index, p_lsl_edge_attr, params["W_lsl"])
    out_scs = gcn_forward(emb_scn, p_scs_edge_index, p_scs_edge_attr, params["W_scs"])
    out_sls = gcn_forward(emb_scn, p_sls_edge_index, p_sls_edge_attr, params["W_sls"])
    out_cc = gcn_forward(emb_cpt, p_cc_edge_index, p_cc_edge_attr, params["W_cc"])
    out_cac = gcn_forward(emb_cpt, p_cac_edge_index, p_cac_edge_attr, params["W_cac"])
    out_csc = gcn_forward(emb_cpt, p_csc_edge_index, p_csc_edge_attr, params["W_csc"])

    combined_cpt = jnp.stack([out_cc, out_cac, out_csc], axis=0)
    combined_scn = jnp.stack([out_scs, out_sls], axis=0)
    fin_out_cpt = metapath_attention_forward(combined_cpt,
                                             params["watt_cpt"], params["batt_cpt"])
    fin_out_scn = metapath_attention_forward(combined_scn,
                                             params["watt_scn"], params["batt_scn"])
    return out_lsl, fin_out_scn, fin_out_cpt


def _ref_projection(a, w1, b1, w2, b2):
    table = _mlp_index_table(a.shape[1], w1, b1, w2, b2)
    mask = (a != 0.0).astype(jnp.float32)
    cnt = mask.sum(-1, keepdims=True)
    acc = mask @ table
    return jnp.where(cnt > 0.0, acc / jnp.where(cnt > 0.0, cnt, 1.0), 0.0)


def _ref_gcn(h, edge_index, edge_attr, W):
    row, col = edge_index[0], edge_index[1]
    for _ in range(GCN_ITERS):
        msg = h[row] * edge_attr[:, None]
        h_agg = jnp.zeros_like(h).at[col].add(msg)
        h = jnp.maximum(h_agg @ W, 0.0)
    return h


def _ref_attention(emb, w_att, b_att):
    scores = jnp.einsum("pne,e->np", emb, w_att.reshape(-1)) + b_att[0]
    att = jax.nn.softmax(scores, axis=1)
    return jnp.einsum("np,pne->ne", att, emb)


def hgc_all_reference(params,
                      lrn_init, scn_init, cpt_init,
                      p_lsl_edge_index, p_lsl_edge_attr,
                      p_scs_edge_index, p_scs_edge_attr,
                      p_sls_edge_index, p_sls_edge_attr,
                      p_cc_edge_index, p_cc_edge_attr,
                      p_cac_edge_index, p_cac_edge_attr,
                      p_csc_edge_index, p_csc_edge_attr):
    emb_lrn = _ref_projection(lrn_init, *params["proj_lrn"])
    emb_scn = _ref_projection(scn_init, *params["proj_scn"])
    emb_cpt = _ref_projection(cpt_init, *params["proj_cpt"])

    out_lsl = _ref_gcn(emb_lrn, p_lsl_edge_index, p_lsl_edge_attr, params["W_lsl"])
    out_scs = _ref_gcn(emb_scn, p_scs_edge_index, p_scs_edge_attr, params["W_scs"])
    out_sls = _ref_gcn(emb_scn, p_sls_edge_index, p_sls_edge_attr, params["W_sls"])
    out_cc = _ref_gcn(emb_cpt, p_cc_edge_index, p_cc_edge_attr, params["W_cc"])
    out_cac = _ref_gcn(emb_cpt, p_cac_edge_index, p_cac_edge_attr, params["W_cac"])
    out_csc = _ref_gcn(emb_cpt, p_csc_edge_index, p_csc_edge_attr, params["W_csc"])

    combined_cpt = jnp.stack([out_cc, out_cac, out_csc], axis=0)
    combined_scn = jnp.stack([out_scs, out_sls], axis=0)
    fin_out_cpt = _ref_attention(combined_cpt, params["watt_cpt"], params["batt_cpt"])
    fin_out_scn = _ref_attention(combined_scn, params["watt_scn"], params["batt_scn"])
    return out_lsl, fin_out_scn, fin_out_cpt


# ----------------------------------------------------------------------------
# Test driver
# ----------------------------------------------------------------------------

def _make_projection_params(key, embedding_dim):
    k1, k2, k3, k4 = jax.random.split(key, 4)
    # Linear weights stored "input-major" (transposed vs. PyTorch .weight).
    w1 = jax.random.normal(k1, (1, HIDDEN), jnp.float32) * 0.5
    b1 = jax.random.normal(k2, (1, HIDDEN), jnp.float32) * 0.1
    w2 = jax.random.normal(k3, (HIDDEN, embedding_dim), jnp.float32) * 0.2
    b2 = jax.random.normal(k4, (1, embedding_dim), jnp.float32) * 0.1
    return (w1, b1, w2, b2)


def _make_edges(key, num_nodes, num_edges):
    k1, k2, k3 = jax.random.split(key, 3)
    row = jax.random.randint(k1, (num_edges,), 0, num_nodes)
    col = jax.random.randint(k2, (num_edges,), 0, num_nodes)
    edge_index = jnp.stack([row, col], axis=0)
    edge_attr = jax.random.uniform(k3, (num_edges,), jnp.float32, 0.1, 1.0)
    return edge_index, edge_attr


def _make_sparse_matrix(key, rows, cols, density=0.4, zero_row=None):
    k1, k2 = jax.random.split(key)
    vals = jax.random.uniform(k1, (rows, cols), jnp.float32, 0.1, 1.0)
    keep = jax.random.bernoulli(k2, density, (rows, cols))
    m = jnp.where(keep, vals, 0.0)
    if zero_row is not None:
        m = m.at[zero_row, :].set(0.0)   # exercise the empty-row branch
    return m


def _check(name, got, want, tol=3e-2):
    scale = float(jnp.maximum(jnp.max(jnp.abs(want)), 1e-3))
    err = float(jnp.max(jnp.abs(got - want))) / scale
    assert err < tol, f"{name}: normalized max error {err:.4e} exceeds {tol}"


if __name__ == "__main__":
    key = jax.random.PRNGKey(0)
    embedding_dim = 32
    num_learners, num_scenes, num_concepts = 8, 16, 12

    keys = iter(jax.random.split(key, 24))

    params = {
        "proj_lrn": _make_projection_params(next(keys), embedding_dim),
        "proj_scn": _make_projection_params(next(keys), embedding_dim),
        "proj_cpt": _make_projection_params(next(keys), embedding_dim),
        "W_lsl": jax.random.normal(next(keys), (embedding_dim, embedding_dim), jnp.float32) * 0.15,
        "W_scs": jax.random.normal(next(keys), (embedding_dim, embedding_dim), jnp.float32) * 0.15,
        "W_sls": jax.random.normal(next(keys), (embedding_dim, embedding_dim), jnp.float32) * 0.15,
        "W_cc": jax.random.normal(next(keys), (embedding_dim, embedding_dim), jnp.float32) * 0.15,
        "W_cac": jax.random.normal(next(keys), (embedding_dim, embedding_dim), jnp.float32) * 0.15,
        "W_csc": jax.random.normal(next(keys), (embedding_dim, embedding_dim), jnp.float32) * 0.15,
        "watt_cpt": jax.random.normal(next(keys), (1, embedding_dim), jnp.float32) * 0.1,
        "batt_cpt": jax.random.normal(next(keys), (1,), jnp.float32) * 0.1,
        "watt_scn": jax.random.normal(next(keys), (1, embedding_dim), jnp.float32) * 0.1,
        "batt_scn": jax.random.normal(next(keys), (1,), jnp.float32) * 0.1,
    }

    lrn_init = _make_sparse_matrix(next(keys), num_learners, num_scenes, zero_row=3)
    scn_init = _make_sparse_matrix(next(keys), num_scenes, num_concepts)
    cpt_init = _make_sparse_matrix(next(keys), num_concepts, num_scenes)

    lsl = _make_edges(next(keys), num_learners, 20)
    scs = _make_edges(next(keys), num_scenes, 32)
    sls = _make_edges(next(keys), num_scenes, 32)
    cc = _make_edges(next(keys), num_concepts, 24)
    cac = _make_edges(next(keys), num_concepts, 24)
    csc = _make_edges(next(keys), num_concepts, 24)

    args = (lrn_init, scn_init, cpt_init,
            lsl[0], lsl[1], scs[0], scs[1], sls[0], sls[1],
            cc[0], cc[1], cac[0], cac[1], csc[0], csc[1])

    out_lsl, fin_out_scn, fin_out_cpt = jax.block_until_ready(
        hgc_all_forward(params, *args))

    ref_lsl, ref_scn, ref_cpt = hgc_all_reference(params, *args)

    assert out_lsl.shape == (num_learners, embedding_dim)
    assert fin_out_scn.shape == (num_scenes, embedding_dim)
    assert fin_out_cpt.shape == (num_concepts, embedding_dim)

    _check("out_lsl", out_lsl, ref_lsl)
    _check("fin_out_scn", fin_out_scn, ref_scn)
    _check("fin_out_cpt", fin_out_cpt, ref_cpt)

    print("KERNEL_OK")
</pallas_src>

<mosaic_0001>
module attributes {stable_mosaic.version = 11 : i64} {
  func.func @_projection_kernel(%arg0: i32, %arg1: i32, %arg2: memref<8x128xbf16, #tpu.memory_space<vmem>>, %arg3: memref<128x128xbf16, #tpu.memory_space<vmem>>, %arg4: memref<8x128xf32, #tpu.memory_space<vmem>>, %arg5: memref<8x128xf32, #tpu.memory_space<vmem>>, %arg6: memref<8x1xf32, #tpu.memory_space<vmem>>) attributes {dimension_semantics = [#tpu.dimension_semantics<parallel>, #tpu.dimension_semantics<arbitrary>], iteration_bounds = array<i64: 1, 1>, scalar_prefetch = 0 : i64, scratch_operands = 2 : i64, tpu.core_type = #tpu.core_type<tc>, window_params = [{transform_indices = @transform_0, window_bounds = array<i64: 8, 128>}, {transform_indices = @transform_1, window_bounds = array<i64: 128, 128>}, {transform_indices = @transform_2, window_bounds = array<i64: 8, 128>}]} {
    %c0_i32 = arith.constant 0 : i32
    %0 = arith.cmpi eq, %arg1, %c0_i32 : i32
    %1 = arith.extui %0 : i1 to i32
    %c0_i32_0 = arith.constant 0 : i32
    %2 = arith.cmpi ne, %1, %c0_i32_0 : i32
    scf.if %2 {
      %cst_15 = arith.constant 0.000000e+00 : f32
      %18 = vector.broadcast %cst_15 : f32 to vector<8x128xf32>
      %c0_16 = arith.constant 0 : index
      %c0_17 = arith.constant 0 : index
      %19 = vector.load %arg5[%c0_16, %c0_17] : memref<8x128xf32, #tpu.memory_space<vmem>>, vector<8x128xf32>
      tpu.vector_store %arg5[%c0_16, %c0_17], %18 {strides = array<i32>} : memref<8x128xf32, #tpu.memory_space<vmem>>, vector<8x128xf32>,
      %cst_18 = arith.constant 0.000000e+00 : f32
      %20 = vector.broadcast %cst_18 : f32 to vector<8x1xf32>
      %c0_19 = arith.constant 0 : index
      %c0_20 = arith.constant 0 : index
      %21 = vector.load %arg6[%c0_19, %c0_20] : memref<8x1xf32, #tpu.memory_space<vmem>>, vector<8x1xf32>
      tpu.vector_store %arg6[%c0_19, %c0_20], %20 {strides = array<i32>} : memref<8x1xf32, #tpu.memory_space<vmem>>, vector<8x1xf32>,
    } else {
    }
    %c0 = arith.constant 0 : index
    %c0_1 = arith.constant 0 : index
    %3 = vector.load %arg2[%c0, %c0_1] : memref<8x128xbf16, #tpu.memory_space<vmem>>, vector<8x128xbf16>
    %c0_2 = arith.constant 0 : index
    %c0_3 = arith.constant 0 : index
    %4 = vector.load %arg5[%c0_2, %c0_3] : memref<8x128xf32, #tpu.memory_space<vmem>>, vector<8x128xf32>
    %c0_4 = arith.constant 0 : index
    %c0_5 = arith.constant 0 : index
    %5 = vector.load %arg3[%c0_4, %c0_5] : memref<128x128xbf16, #tpu.memory_space<vmem>>, vector<128x128xbf16>
    %cst = arith.constant dense<0.000000e+00> : vector<8x128xf32>
    %6 = tpu.matmul %3, %5, %cst {dimension_numbers = #tpu.dot_dimension_numbers<[1], [0], [0], [1], [0, 0, 1, 1], [], []>} : vector<8x128xbf16>, vector<128x128xbf16>, vector<8x128xf32> -> vector<8x128xf32>
    %7 = arith.addf %4, %6 : vector<8x128xf32>
    %c0_6 = arith.constant 0 : index
    %c0_7 = arith.constant 0 : index
    %8 = vector.load %arg5[%c0_6, %c0_7] : memref<8x128xf32, #tpu.memory_space<vmem>>, vector<8x128xf32>
    tpu.vector_store %arg5[%c0_6, %c0_7], %7 {strides = array<i32>} : memref<8x128xf32, #tpu.memory_space<vmem>>, vector<8x128xf32>,
    %c0_8 = arith.constant 0 : index
    %c0_9 = arith.constant 0 : index
    %9 = vector.load %arg6[%c0_8, %c0_9] : memref<8x1xf32, #tpu.memory_space<vmem>>, vector<8x1xf32>
    %10 = arith.extf %3 : vector<8x128xbf16> to vector<8x128xf32>
    %cst_10 = arith.constant dense<0.000000e+00> : vector<8xf32>
    %11 = vector.multi_reduction <add>, %10, %cst_10 [1] : vector<8x128xf32> to vector<8xf32>
    %12 = vector.shape_cast %11 : vector<8xf32> to vector<8x1xf32>
    %13 = arith.addf %9, %12 : vector<8x1xf32>
    %c0_11 = arith.constant 0 : index
    %c0_12 = arith.constant 0 : index
    %14 = vector.load %arg6[%c0_11, %c0_12] : memref<8x1xf32, #tpu.memory_space<vmem>>, vector<8x1xf32>
    tpu.vector_store %arg6[%c0_11, %c0_12], %13 {strides = array<i32>} : memref<8x1xf32, #tpu.memory_space<vmem>>, vector<8x1xf32>,
    %c0_i32_13 = arith.constant 0 : i32
    %15 = arith.cmpi eq, %arg1, %c0_i32_13 : i32
    %16 = arith.extui %15 : i1 to i32
    %c0_i32_14 = arith.constant 0 : i32
    %17 = arith.cmpi ne, %16, %c0_i32_14 : i32
    scf.if %17 {
      %c0_15 = arith.constant 0 : index
      %c0_16 = arith.constant 0 : index
      %18 = vector.load %arg6[%c0_15, %c0_16] : memref<8x1xf32, #tpu.memory_space<vmem>>, vector<8x1xf32>
      %cst_17 = arith.constant 0.000000e+00 : f32
      %19 = vector.broadcast %cst_17 : f32 to vector<8x1xf32>
      %20 = arith.cmpf ogt, %18, %19 : vector<8x1xf32>
      %cst_18 = arith.constant 1.000000e+00 : f32
      %21 = vector.broadcast %cst_18 : f32 to vector<8x1xf32>
      %22 = arith.select %20, %18, %21 : vector<8x1xi1>, vector<8x1xf32>
      %23 = tpu.reciprocal %22 {approx = true} : vector<8x1xf32> -> vector<8x1xf32>
      %cst_19 = arith.constant 0.000000e+00 : f32
      %24 = vector.broadcast %cst_19 : f32 to vector<8x1xf32>
      %25 = arith.cmpf ogt, %18, %24 : vector<8x1xf32>
      %c0_20 = arith.constant 0 : index
      %c0_21 = arith.constant 0 : index
      %26 = vector.load %arg5[%c0_20, %c0_21] : memref<8x128xf32, #tpu.memory_space<vmem>>, vector<8x128xf32>
      %27 = vector.broadcast %23 : vector<8x1xf32> to vector<8x128xf32>
      %28 = arith.mulf %26, %27 : vector<8x128xf32>
      %cst_22 = arith.constant 0.000000e+00 : f32
      %29 = vector.shape_cast %25 : vector<8x1xi1> to vector<8x1xi1>
      %30 = vector.broadcast %29 : vector<8x1xi1> to vector<8x128xi1>
      %31 = vector.broadcast %cst_22 : f32 to vector<8x128xf32>
      %32 = arith.select %30, %28, %31 : vector<8x128xi1>, vector<8x128xf32>
      %c0_23 = arith.constant 0 : index
      %c0_24 = arith.constant 0 : index
      %33 = vector.load %arg4[%c0_23, %c0_24] : memref<8x128xf32, #tpu.memory_space<vmem>>, vector<8x128xf32>
      tpu.vector_store %arg4[%c0_23, %c0_24], %32 {strides = array<i32>} : memref<8x128xf32, #tpu.memory_space<vmem>>, vector<8x128xf32>,
    } else {
    }
    return
  }
  func.func @transform_0(%arg0: i32, %arg1: i32) -> (i32, i32) {
    %c0_i32 = arith.constant 0 : i32
    return %arg0, %arg1 : i32, i32
  }
  func.func @transform_1(%arg0: i32, %arg1: i32) -> (i32, i32) {
    %c0_i32 = arith.constant 0 : i32
    %c0_i32_0 = arith.constant 0 : i32
    return %arg1, %c0_i32 : i32, i32
  }
  func.func @transform_2(%arg0: i32, %arg1: i32) -> (i32, i32) {
    %c0_i32 = arith.constant 0 : i32
    %c0_i32_0 = arith.constant 0 : i32
    return %arg0, %c0_i32 : i32, i32
  }
}

</mosaic_0001>

<bundles_post_ra>
// kernel: tpu_custom_call.1
= control target key start
LH: loop header
LB: loop body
LE: loop exit
PB: predicated region body
PF: predicated region fallthrough
CT: control target
= control target key end

     0   :  { %7 = vsyncpa [#allocation5], 0  ;;  %s338_s0 = inlined_call_operand.hbm [shape: bf16[8,128], index: 0, kind: input, shape index: {}]   ;;  %s339_s1 = inlined_call_operand.hbm [shape: bf16[128,128], index: 1, kind: input, shape index: {}]   ;;  %s340_s2 = inlined_call_operand.hbm [shape: f32[8,128], index: 2, kind: output, shape index: {}]  }
   0x1   :  { %8 = vsyncpa [#allocation8], 0 }
   0x2   :  { %9 = vsyncpa [#allocation6], 0  ;;  %s15_s11 = sshll.u32 %s338_s0, 4  ;;  %s305_s12 = smov [#allocation4]   ;;  %s16_s11 = int_to_ptr.hbm [resolvable:$true] %s15_s11 }
   0x3   :  { %s17_s13 = sshll.u32 %s305_s12, 4  ;;  %s25_s16 = sshll.u32 %s339_s1, 4  ;;  %s18_s13 = int_to_ptr.vmem [resolvable:$true] %s17_s13  ;;  %s26_s16 = int_to_ptr.hbm [resolvable:$true] %s25_s16 }
   0x4   :  { %20 = dma.hbm_to_vmem [thread:$0]  %s16_s11, 64, %s18_s13, [#allocation5]  }
   0x5   :  { %s306_s17 = smov [#allocation7]   ;;  %s307_s19 = smov 64  }
   0x6   :  { %s27_s18 = sshll.u32 %s306_s17, 4  ;;  %s308_s20 = smov 4   ;;  %s28_s18 = int_to_ptr.vmem [resolvable:$true] %s27_s18 }
   0x7   :  { %33 = dma.hbm_to_vmem [thread:$0]  %s26_s16, 1024, %s28_s18, [#allocation8], %s307_s19, %s307_s19, %s308_s20  }
   0x8   :  { %299 = dma.done.wait [#allocation5], 64  }
   0x9   :  { %300 = vsyncadd [#allocation5], 4294967232 }
   0xa   :  { %301 = dma.done.wait [#allocation8], 1024  }
   0xb   :  { %302 = vsyncadd [#allocation8], 4294966272  ;;  %v49_v0 = vld [vmem:[#allocation4] sm:$0xf]  ;;  %vm47_vm0 = vcmask 7168   ;;  %v214_v3 = vld [vmem:[#allocation7 + $0x30] sm:$0xff] }
   0xc   :  { %v215_v1 = vld [vmem:[#allocation7 + $0x38] sm:$0xff]  ;;  %v131_v2 = vunpack.c.l.bf16 %v49_v0  ;;  %v309_v4 = vmov 0.0   ;;  %v213_v5 = vld [vmem:[#allocation7 + $0x28] sm:$0xff]  ;;  %v212_v6 = vld [vmem:[#allocation7 + $0x20] sm:$0xff]  ;;  %v310_v11 = vmov 0   ;;  %s311_s0 = smov [#allocation9]  }
   0xd   :  { %115 = vmatpush.bf16.msra.mxu0 %v215_v1  ;;  %48 = vst.msk [vmem:[#allocation3] sm:$0xff] %vm47_vm0, %v309_v4  ;;  %v211_v7 = vld [vmem:[#allocation7 + $0x18] sm:$0xff]  ;;  %v210_v8 = vld [vmem:[#allocation7 + $0x10] sm:$0xff]  ;;  %v209_v9 = vld [vmem:[#allocation7 + $0x8] sm:$0xff]  ;;  %224 = vset.pattern.permute.xlu1 %v310_v11  ;;  %s163_s1 = sshll.u32 %s311_s0, 4  ;;  %s165_s23 = sshll.u32 %s340_s2, 4  ;;  %s164_s1 = int_to_ptr.vmem [resolvable:$true] %s163_s1  ;;  %s166_s23 = int_to_ptr.hbm [resolvable:$true] %s165_s23 }
   0xe   :  { %132 = vadd.xlane.f32.xlu0 %v131_v2  ;;  %v208_v10 = vld [vmem:[#allocation7] sm:$0xff] }
   0xf   :  { %223 = vset.pattern.permute.xlu0 %v310_v11 }
  0x11   :  { %116 = vmatpush.bf16.msra.mxu0 %v214_v3 }
  0x14   :  { %v130_v12 = vld [vmem:[#allocation3] sm:$0xff] }
  0x15   :  { %117 = vmatpush.bf16.msra.mxu0 %v213_v5 }
  0x19   :  { %118 = vmatpush.bf16.msra.mxu0 %v212_v6 }
  0x1d   :  { %119 = vmatpush.bf16.msra.mxu0 %v211_v7 }
  0x21   :  { %120 = vmatpush.bf16.msra.mxu0 %v210_v8 }
  0x25   :  { %121 = vmatpush.bf16.msra.mxu0 %v209_v9 }
  0x29   :  { %122 = vmatpush.bf16.msra.mxu0 %v208_v10 }
  0x2c   :  { %123 = vmatmul.bf16.vlgmr.msra.gmra.mxu0 %v49_v0 }
  0x81   :  { %v133_v13 = vpop.xlane.xlu0 %132 }
  0x82   :  { %v134_v14 = vadd.f32 %v133_v13, %v130_v12 }
  0x84   :  { %136 = vst.msk [vmem:[#allocation3] sm:$0xff] %vm47_vm0, %v134_v14 }
  0x8b   :  { %v140_v15 = vld [vmem:[#allocation3] sm:$0xff] }
  0x8c   :  { %vm141_vm1 = vcmp.gt.f32.partialorder %v140_v15, 0.0 }
  0x8d   :  { %v151_v16 = vsel %vm141_vm1, 1, %v310_v11  ;;  %v142_v17 = vsel %vm141_vm1, %v140_v15, 1.0 }
  0x8e   :  { %153 = vperm.xlu1 %224, %v151_v16   ;;  %225 = vrcp.f32 %v142_v17 }
  0x94   :  { %v226_v18 = vpop.eup %225 }
  0x95   :  { %147 = vperm.xlu0 %223, %v226_v18  }
  0xa9   :  { %v124_v19 = vpop.f32.mrf.mxu0 }
  0xb1   :  { %v126_v20 = vpop.f32.mrf.mxu0 }
 0x100   :  { %v154_v21 = vpop.permute.xlu1 %153 }
 0x101   :  { %vm155_vm2 = vcmp.eq.s32.totalorder %v154_v21, 1 }
 0x107   :  { %v148_v22 = vpop.permute.xlu0 %147 }
 0x108   :  { %v150_v23 = vmul.f32 %v148_v22, %v124_v19 }
 0x10a   :  { %v156_v24 = vsel %vm155_vm2, %v150_v23, 0.0 }
 0x10b   :  { %157 = vst [vmem:[#allocation9] sm:$0xff] %v156_v24 }
 0x10c   :  { %168 = dma.vmem_to_hbm [thread:$0]  %s164_s1, 128, %s166_s23, [#allocation6]  }
 0x10d   :  { %303 = dma.done.wait [#allocation6], 128  }
 0x10e   :  { %304 = vsyncadd [#allocation6], 4294967168 }
 0x10f   :  { %173 = vsyncpa [#allocation5], 1 }
 0x110   :  { %174 = vsyncpa [#allocation8], 1 }
 0x111   :  { %175 = vsyncpa [#allocation6], 1 }

</bundles_post_ra>
